<compile_context>
chip_gen: v5e
topology: v5e:2x2
jax: 0.10.0
libtpu: 0.0.40
codegen_flags: <defaults>
</compile_context>

<pallas_src>
import jax
import jax.numpy as jnp
from jax.experimental import pallas as pl
from jax.experimental.pallas import tpu as pltpu


LANE = 128  # TPU lane width / MXU column granularity


def _round_up(x, m):
    return ((x + m - 1) // m) * m


def _pick_tm(batch, target=512, min_steps=4):
    """Pick a batch row-tile (multiple of 8) from divisors of round_up(batch, 8).

    Prefers the largest divisor <= target that still yields >= min_steps grid
    steps (so both v7x TensorCores get work and x-tile DMA can pipeline);
    falls back to the largest divisor <= target for small batches.
    """
    bp = _round_up(batch, 8)
    limit = min(target, bp)
    best = None
    for cand in range(limit - limit % 8, 7, -8):
        if bp % cand == 0:
            if best is None:
                best = cand           # largest divisor <= target (fallback)
            if bp // cand >= min_steps:
                return cand           # largest divisor that also gives >=4 steps
    return best if best is not None else 8


def mlp_kernel(x_ref, w1_ref, b1_ref, w2_ref, b2_ref, o_ref):
    # linear1 on the MXU: bf16 operands, f32 accumulation.
    x = x_ref[...].astype(jnp.bfloat16)                               # (tm, K)
    h = jnp.dot(x, w1_ref[...], preferred_element_type=jnp.float32)   # (tm, Hp)
    h = jnp.maximum(h + b1_ref[...], 0.0)                             # bias + ReLU in f32
    # linear2 folded into a lane-dense 128-wide output slab: only column 0 of
    # W2/b2 is non-zero, so the store below is a full unmasked (tm, 128) slab.
    out = jnp.dot(h.astype(jnp.bfloat16), w2_ref[...],
                  preferred_element_type=jnp.float32)                 # (tm, 128)
    o_ref[...] = out + b2_ref[...]


def prepare_params(w1, b1, w2, b2):
    """One-time parameter prep (hoisted out of the per-call path).

    Pads the hidden dim to a lane multiple, folds the H->1 linear2 into a
    zero-padded 128-wide slab, and stores matmul operands in bf16 (MXU-native).
    Padding is exact: padded hidden cols of W1/b1 are zero -> ReLU(0) = 0, and
    padded rows/cols of W2/b2 are zero -> they contribute nothing.

    w1: (K, H)  pre-transposed nn.Linear weight
    b1: (1, H) or (H,)
    w2: (H, 1)  pre-transposed nn.Linear weight
    b2: (1, 1) or (1,)
    """
    K, H = w1.shape
    Hp = _round_up(H, LANE)
    bf16, f32 = jnp.bfloat16, jnp.float32
    w1_p = jnp.zeros((K, Hp), bf16).at[:, :H].set(w1.astype(bf16))
    b1_p = jnp.zeros((1, Hp), f32).at[:, :H].set(b1.reshape(1, H).astype(f32))
    w2_p = jnp.zeros((Hp, LANE), bf16).at[:H, :1].set(w2.reshape(H, 1).astype(bf16))
    b2_p = jnp.zeros((1, LANE), f32).at[:, :1].set(b2.reshape(1, 1).astype(f32))
    return w1_p, b1_p, w2_p, b2_p


def net_forward(x, params, *, target_tm=512):
    """Forward pass of Net: x (B, K) f32 -> (B, 1) f32."""
    w1_p, b1_p, w2_p, b2_p = params
    B, K = x.shape
    Kw, Hp = w1_p.shape
    assert K == Kw, "x feature dim does not match prepared W1"

    tm = _pick_tm(B, target=target_tm)
    grid = (pl.cdiv(B, tm),)   # partial tail tile handled by clamped reads / masked writes

    # Raise the scoped VMEM limit only when the resident weights plus the
    # double-buffered x/out tiles would not fit the default scoped limit
    # (32 MiB on v6e/v7x, 16 MiB on v5e).
    resident = (w1_p.size * 2 + w2_p.size * 2 + b1_p.size * 4 + b2_p.size * 4)
    pipelined = 2 * tm * (K * x.dtype.itemsize + LANE * 4)
    vmem_limit = None
    if resident + pipelined > (24 << 20):
        vmem_limit = min(int((resident + pipelined) * 1.5) + (8 << 20), 100 << 20)

    out_padded = pl.pallas_call(
        mlp_kernel,
        out_shape=jax.ShapeDtypeStruct((B, LANE), jnp.float32),
        grid_spec=pltpu.PrefetchScalarGridSpec(
            num_scalar_prefetch=0,
            grid=grid,
            in_specs=[
                # x: tiled over batch, double-buffered by the pipeline; the lane
                # dim is the full (unpadded) K, so no padded x copy in HBM.
                pl.BlockSpec((tm, K), lambda i: (i, 0)),
                # Weights / biases: whole-array VMEM-resident, single-buffered
                # (constant across grid steps -> pipelining them is pointless).
                pl.BlockSpec(memory_space=pltpu.MemorySpace.VMEM),   # W1 (K, Hp) bf16
                pl.BlockSpec(memory_space=pltpu.MemorySpace.VMEM),   # b1 (1, Hp) f32
                pl.BlockSpec(memory_space=pltpu.MemorySpace.VMEM),   # W2 (Hp, 128) bf16
                pl.BlockSpec(memory_space=pltpu.MemorySpace.VMEM),   # b2 (1, 128) f32
            ],
            out_specs=pl.BlockSpec((tm, LANE), lambda i: (i, 0)),
        ),
        compiler_params=pltpu.CompilerParams(
            dimension_semantics=("parallel",),   # shard batch tiles across TCs (v7x)
            vmem_limit_bytes=vmem_limit,
        ),
    )(x, w1_p, b1_p, w2_p, b2_p)

    return out_padded[:, :1]


def init_params(key, num_in, num_hidden):
    # Deterministic init mimicking torch nn.Linear: U(-1/sqrt(fan_in), 1/sqrt(fan_in)).
    k1, k2, k3, k4 = jax.random.split(key, 4)
    bound1 = 1.0 / jnp.sqrt(num_in)
    bound2 = 1.0 / jnp.sqrt(num_hidden)
    w1 = jax.random.uniform(k1, (num_in, num_hidden), jnp.float32, -bound1, bound1)
    b1 = jax.random.uniform(k2, (1, num_hidden), jnp.float32, -bound1, bound1)
    w2 = jax.random.uniform(k3, (num_hidden, 1), jnp.float32, -bound2, bound2)
    b2 = jax.random.uniform(k4, (1, 1), jnp.float32, -bound2, bound2)
    return w1, b1, w2, b2


if __name__ == "__main__":
    key = jax.random.PRNGKey(0)
    k_x, k_p = jax.random.split(key)

    batch, num_in, num_hidden = 8, 32, 64
    x = jax.random.normal(k_x, (batch, num_in), jnp.float32)
    w1, b1, w2, b2 = init_params(k_p, num_in, num_hidden)

    params = prepare_params(w1, b1, w2, b2)   # one-time prep, not per forward call
    out = net_forward(x, params)
    jax.block_until_ready(out)

    # Pure-JAX f32 reference of the original module.  The kernel uses bf16 MXU
    # operands with f32 accumulation, so tolerance is loosened to ~1e-2.
    ref = jnp.maximum(x @ w1 + b1, 0.0) @ w2 + b2
    assert out.shape == (batch, 1)
    assert jnp.allclose(out, ref, atol=2e-2, rtol=2e-2), \
        float(jnp.max(jnp.abs(out - ref)))

    print("KERNEL_OK")
</pallas_src>

<mosaic_0001>
module attributes {stable_mosaic.version = 11 : i64} {
  func.func @mlp_kernel(%arg0: i32, %arg1: memref<8x32xf32, #tpu.memory_space<vmem>>, %arg2: memref<32x128xbf16, #tpu.memory_space<vmem>>, %arg3: memref<1x128xf32, #tpu.memory_space<vmem>>, %arg4: memref<128x128xbf16, #tpu.memory_space<vmem>>, %arg5: memref<1x128xf32, #tpu.memory_space<vmem>>, %arg6: memref<8x128xf32, #tpu.memory_space<vmem>>) attributes {dimension_semantics = [#tpu.dimension_semantics<parallel>], iteration_bounds = array<i64: 1>, scalar_prefetch = 0 : i64, scratch_operands = 0 : i64, tpu.core_type = #tpu.core_type<tc>, window_params = [{transform_indices = @transform_0, window_bounds = array<i64: 8, 32>}, {pipeline_mode = #tpu.pipeline_mode<synchronous>, transform_indices = @transform_1, window_bounds = array<i64: 32, 128>}, {pipeline_mode = #tpu.pipeline_mode<synchronous>, transform_indices = @transform_2, window_bounds = array<i64: 1, 128>}, {pipeline_mode = #tpu.pipeline_mode<synchronous>, transform_indices = @transform_3, window_bounds = array<i64: 128, 128>}, {pipeline_mode = #tpu.pipeline_mode<synchronous>, transform_indices = @transform_4, window_bounds = array<i64: 1, 128>}, {transform_indices = @transform_5, window_bounds = array<i64: 8, 128>}]} {
    %c0 = arith.constant 0 : index
    %c0_0 = arith.constant 0 : index
    %0 = vector.load %arg1[%c0, %c0_0] : memref<8x32xf32, #tpu.memory_space<vmem>>, vector<8x32xf32>
    %1 = arith.truncf %0 : vector<8x32xf32> to vector<8x32xbf16>
    %c0_1 = arith.constant 0 : index
    %c0_2 = arith.constant 0 : index
    %2 = vector.load %arg2[%c0_1, %c0_2] : memref<32x128xbf16, #tpu.memory_space<vmem>>, vector<32x128xbf16>
    %cst = arith.constant dense<0.000000e+00> : vector<8x128xf32>
    %3 = tpu.matmul %1, %2, %cst {dimension_numbers = #tpu.dot_dimension_numbers<[1], [0], [0], [1], [0, 0, 1, 1], [], []>} : vector<8x32xbf16>, vector<32x128xbf16>, vector<8x128xf32> -> vector<8x128xf32>
    %c0_3 = arith.constant 0 : index
    %c0_4 = arith.constant 0 : index
    %4 = vector.load %arg3[%c0_3, %c0_4] : memref<1x128xf32, #tpu.memory_space<vmem>>, vector<1x128xf32>
    %5 = vector.broadcast %4 : vector<1x128xf32> to vector<8x128xf32>
    %6 = arith.addf %3, %5 : vector<8x128xf32>
    %cst_5 = arith.constant 0.000000e+00 : f32
    %7 = vector.broadcast %cst_5 : f32 to vector<8x128xf32>
    %8 = arith.maximumf %6, %7 : vector<8x128xf32>
    %9 = arith.truncf %8 : vector<8x128xf32> to vector<8x128xbf16>
    %c0_6 = arith.constant 0 : index
    %c0_7 = arith.constant 0 : index
    %10 = vector.load %arg4[%c0_6, %c0_7] : memref<128x128xbf16, #tpu.memory_space<vmem>>, vector<128x128xbf16>
    %cst_8 = arith.constant dense<0.000000e+00> : vector<8x128xf32>
    %11 = tpu.matmul %9, %10, %cst_8 {dimension_numbers = #tpu.dot_dimension_numbers<[1], [0], [0], [1], [0, 0, 1, 1], [], []>} : vector<8x128xbf16>, vector<128x128xbf16>, vector<8x128xf32> -> vector<8x128xf32>
    %c0_9 = arith.constant 0 : index
    %c0_10 = arith.constant 0 : index
    %12 = vector.load %arg5[%c0_9, %c0_10] : memref<1x128xf32, #tpu.memory_space<vmem>>, vector<1x128xf32>
    %13 = vector.broadcast %12 : vector<1x128xf32> to vector<8x128xf32>
    %14 = arith.addf %11, %13 : vector<8x128xf32>
    %c0_11 = arith.constant 0 : index
    %c0_12 = arith.constant 0 : index
    %15 = vector.load %arg6[%c0_11, %c0_12] : memref<8x128xf32, #tpu.memory_space<vmem>>, vector<8x128xf32>
    tpu.vector_store %arg6[%c0_11, %c0_12], %14 {strides = array<i32>} : memref<8x128xf32, #tpu.memory_space<vmem>>, vector<8x128xf32>,
    return
  }
  func.func @transform_0(%arg0: i32) -> (i32, i32) {
    %c0_i32 = arith.constant 0 : i32
    %c0_i32_0 = arith.constant 0 : i32
    return %arg0, %c0_i32 : i32, i32
  }
  func.func @transform_1(%arg0: i32) -> (i32, i32) {
    %c0_i32 = arith.constant 0 : i32
    %c0_i32_0 = arith.constant 0 : i32
    %c0_i32_1 = arith.constant 0 : i32
    return %c0_i32, %c0_i32_0 : i32, i32
  }
  func.func @transform_2(%arg0: i32) -> (i32, i32) {
    %c0_i32 = arith.constant 0 : i32
    %c0_i32_0 = arith.constant 0 : i32
    %c0_i32_1 = arith.constant 0 : i32
    return %c0_i32, %c0_i32_0 : i32, i32
  }
  func.func @transform_3(%arg0: i32) -> (i32, i32) {
    %c0_i32 = arith.constant 0 : i32
    %c0_i32_0 = arith.constant 0 : i32
    %c0_i32_1 = arith.constant 0 : i32
    return %c0_i32, %c0_i32_0 : i32, i32
  }
  func.func @transform_4(%arg0: i32) -> (i32, i32) {
    %c0_i32 = arith.constant 0 : i32
    %c0_i32_0 = arith.constant 0 : i32
    %c0_i32_1 = arith.constant 0 : i32
    return %c0_i32, %c0_i32_0 : i32, i32
  }
  func.func @transform_5(%arg0: i32) -> (i32, i32) {
    %c0_i32 = arith.constant 0 : i32
    %c0_i32_0 = arith.constant 0 : i32
    return %arg0, %c0_i32 : i32, i32
  }
}

</mosaic_0001>

<bundles_post_ra>
// kernel: tpu_custom_call.1
= control target key start
LH: loop header
LB: loop body
LE: loop exit
PB: predicated region body
PF: predicated region fallthrough
CT: control target
= control target key end

     0   :  { %10 = vsyncpa [#allocation3], 0  ;;  %s423_s0 = inlined_call_operand.hbm [shape: f32[8,32], index: 0, kind: input, shape index: {}]   ;;  %s424_s1 = inlined_call_operand.hbm [shape: bf16[32,128], index: 1, kind: input, shape index: {}]   ;;  %s425_s2 = inlined_call_operand.vmem [shape: f32[1,128], index: 2, kind: input, shape index: {}]   ;;  %s426_s3 = inlined_call_operand.hbm [shape: bf16[128,128], index: 3, kind: input, shape index: {}]   ;;  %s427_s4 = inlined_call_operand.vmem [shape: f32[1,128], index: 4, kind: input, shape index: {}]   ;;  %s428_s5 = inlined_call_operand.hbm [shape: f32[8,128], index: 5, kind: output, shape index: {}]  }
   0x1   :  { %11 = vsyncpa [#allocation6], 0  ;;  %s28_s20 = sshll.u32 %s424_s1, 4  ;;  %s29_s20 = int_to_ptr.hbm [resolvable:$true] %s28_s20 }
   0x2   :  { %12 = vsyncpa [#allocation4], 0  ;;  %s369_s21 = smov [#allocation5]   ;;  %s18_s25 = sshll.u32 %s423_s0, 4  ;;  %s19_s25 = int_to_ptr.hbm [resolvable:$true] %s18_s25 }
   0x3   :  { %s30_s22 = sshll.u32 %s369_s21, 4  ;;  %s370_s26 = smov 64   ;;  %s31_s22 = int_to_ptr.vmem [resolvable:$true] %s30_s22 }
   0x4   :  { %s371_s27 = smov 4   ;;  %s372_s28 = smov [#allocation2]  }
   0x5   :  { %36 = dma.hbm_to_vmem [thread:$0]  %s29_s20, 256, %s31_s22, [#allocation6], %s370_s26, %s370_s26, %s371_s27  }
   0x6   :  { %s20_s29 = sshll.u32 %s372_s28, 4  ;;  %s43_s7 = sshll.u32 %s426_s3, 4  ;;  %s21_s29 = int_to_ptr.vmem [resolvable:$true] %s20_s29  ;;  %s44_s7 = int_to_ptr.hbm [resolvable:$true] %s43_s7 }
   0x7   :  { %23 = dma.hbm_to_vmem [thread:$0]  %s19_s25, 128, %s21_s29, [#allocation3]  }
   0x8   :  { %s373_s1 = smov [#allocation7]  }
   0x9   :  { %s45_s8 = sshll.u32 %s373_s1, 4  ;;  %s46_s8 = int_to_ptr.vmem [resolvable:$true] %s45_s8 }
   0xa   :  { %51 = dma.hbm_to_vmem [thread:$0]  %s44_s7, 1024, %s46_s8, [#allocation6], %s370_s26, %s370_s26, %s371_s27  }
   0xb   :  { %363 = dma.done.wait [#allocation3], 128  }
   0xc   :  { %364 = vsyncadd [#allocation3], 4294967168 }
   0xd   :  { %365 = dma.done.wait [#allocation6], 1280  }
   0xe   :  { %366 = vsyncadd [#allocation6], 4294966016  ;;  %v250_v0 = vld [vmem:[#allocation5 + $0x8] sm:$0xff]  ;;  %v249_v2 = vld [vmem:[#allocation5] sm:$0xff]  ;;  %vm89_vm0 = vcmask 261120   ;;  %s374_s11 = smov [#allocation8]  }
   0xf   :  { %v258_v1 = vld [vmem:[#allocation7 + $0x38] sm:$0xff]  ;;  %99 = vmatpush.bf16.msra.mxu0 %v250_v0  ;;  %v67_v3 = vld [vmem:[#allocation2] sm:$0xff]  ;;  %v257_v4 = vld [vmem:[#allocation7 + $0x30] sm:$0xff]  ;;  %s195_s12 = sshll.u32 %s374_s11, 4  ;;  %s197_s15 = sshll.u32 %s428_s5, 4  ;;  %s196_s12 = int_to_ptr.vmem [resolvable:$true] %s195_s12  ;;  %s198_s15 = int_to_ptr.hbm [resolvable:$true] %s197_s15 }
  0x10   :  { %176 = vmatpush.bf16.msra.mxu1 %v258_v1  ;;  %v68_v5 = vpack.c.bf16 %v67_v3, %v67_v3  ;;  %v256_v6 = vld [vmem:[#allocation7 + $0x28] sm:$0xff]  ;;  %v255_v7 = vld [vmem:[#allocation7 + $0x20] sm:$0xff]  ;;  %v254_v8 = vld [vmem:[#allocation7 + $0x18] sm:$0xff] }
  0x11   :  { %v253_v9 = vld [vmem:[#allocation7 + $0x10] sm:$0xff]  ;;  %v252_v10 = vld [vmem:[#allocation7 + $0x8] sm:$0xff]  ;;  %v251_v11 = vld [vmem:[#allocation7] sm:$0xff] }
  0x12   :  { %v265_v12 = vld [vmem:[%s425_s2] ss:$0 sm:$0xff] }
  0x13   :  { %100 = vmatpush.bf16.msra.mxu0 %v249_v2  ;;  %v266_v18 = vld [vmem:[%s427_s4] ss:$0 sm:$0xff] }
  0x14   :  { %177 = vmatpush.bf16.msra.mxu1 %v257_v4 }
  0x16   :  { %216 = vmatmul.msk.bf16.vlgmr.msra.gmra.mxu0 %vm89_vm0, %v68_v5 }
  0x18   :  { %178 = vmatpush.bf16.msra.mxu1 %v256_v6 }
  0x1c   :  { %179 = vmatpush.bf16.msra.mxu1 %v255_v7 }
  0x20   :  { %180 = vmatpush.bf16.msra.mxu1 %v254_v8 }
  0x24   :  { %181 = vmatpush.bf16.msra.mxu1 %v253_v9 }
  0x28   :  { %182 = vmatpush.bf16.msra.mxu1 %v252_v10 }
  0x2c   :  { %183 = vmatpush.bf16.msra.mxu1 %v251_v11 }
  0x93   :  { %v102_v13 = vpop.f32.mrf.mxu0 }
  0x94   :  { %v103_v14 = vadd.f32 %v265_v12, %v102_v13 }
  0x96   :  { %v106_v15 = vmax.f32 %v103_v14, 0.0 }
  0x98   :  { %v107_v16 = vpack.c.bf16 %v106_v15, %v106_v15 }
  0x9a   :  { %184 = vmatmul.bf16.vlgmr.msra.gmra.mxu1 %v107_v16 }
  0x9b   :  { %v104_v17 = vpop.f32.mrf.mxu0 }
 0x117   :  { %v185_v19 = vpop.f32.mrf.mxu1 }
 0x118   :  { %v186_v20 = vadd.f32 %v266_v18, %v185_v19 }
 0x11a   :  { %189 = vst [vmem:[#allocation8] sm:$0xff] %v186_v20 }
 0x11b   :  { %200 = dma.vmem_to_hbm [thread:$0]  %s196_s12, 128, %s198_s15, [#allocation4]  }
 0x11f   :  { %v187_v21 = vpop.f32.mrf.mxu1 }
 0x120   :  { %367 = dma.done.wait [#allocation4], 128  }
 0x121   :  { %368 = vsyncadd [#allocation4], 4294967168 }
 0x122   :  { %205 = vsyncpa [#allocation3], 1 }
 0x123   :  { %206 = vsyncpa [#allocation6], 1 }
 0x124   :  { %207 = vsyncpa [#allocation4], 1 }

</bundles_post_ra>
